<compile_context>
chip_gen: v5e
topology: v5e:2x2
jax: 0.10.0
libtpu: 0.0.40
codegen_flags: <defaults>
</compile_context>

<pallas_src>
import jax
import jax.numpy as jnp
from jax.experimental import pallas as pl
from jax.experimental.pallas import tpu as pltpu


# ------------------------------ Pallas kernel -------------------------------

def _decoder_kernel(x_ref, h0_ref, c0_ref, w_ref, b_ref, fcw_ref, fcb_ref,
                    out_ref, h_out_ref, c_out_ref, xh_s, c_s):
    """One grid step = one LSTM timestep + fused fc.

    x_ref   : (B_pad, E)        per-step embedding slice
    h0_ref  : (B_pad, H)        initial hidden (constant block)
    c0_ref  : (B_pad, H)        initial cell   (constant block)
    w_ref   : (E+H, 4H)         stacked [w_ih^T ; w_hh^T]
    b_ref   : (1, 4H)           b_ih + b_hh
    fcw_ref : (H, V_pad)        fc.weight^T (zero-padded cols)
    fcb_ref : (1, V_pad)        fc.bias     (zero-padded)
    out_ref : (B_pad, V_pad)    per-step logits block
    h_out_ref, c_out_ref : (B_pad, H) final states
    xh_s    : (B_pad, E+H)      persistent [x | h] tile (h lives in tail)
    c_s     : (B_pad, H)        persistent cell state
    """
    t = pl.program_id(0)
    E = x_ref.shape[-1]
    H = c_s.shape[-1]

    @pl.when(t == 0)
    def _():
        xh_s[:, E:E + H] = h0_ref[...]
        c_s[...] = c0_ref[...]

    # Load this step's embedding into the head of the persistent [x|h] tile.
    xh_s[:, 0:E] = x_ref[...]

    # Single K=E+H MXU matmul for all 4 gates.
    gates = (
        jnp.dot(xh_s[...], w_ref[...], preferred_element_type=jnp.float32)
        + b_ref[...]
    )
    i = jax.nn.sigmoid(gates[:, 0:H])
    f = jax.nn.sigmoid(gates[:, H:2 * H])
    g = jnp.tanh(gates[:, 2 * H:3 * H])
    o = jax.nn.sigmoid(gates[:, 3 * H:4 * H])

    c_new = f * c_s[...] + i * g
    h_new = o * jnp.tanh(c_new)

    c_s[...] = c_new
    xh_s[:, E:E + H] = h_new          # h state lives in the tail of xh_s

    # Fused output projection (lane-dense 128-wide padded vocab).
    out_ref[...] = (
        jnp.dot(h_new, fcw_ref[...], preferred_element_type=jnp.float32)
        + fcb_ref[...]
    )

    # Final-state outputs use a constant block index -> last write wins.
    h_out_ref[...] = h_new
    c_out_ref[...] = c_new


# -------------------------------- Wrapper ------------------------------------

def _round_up(n, m):
    return ((n + m - 1) // m) * m


@jax.jit
def decoder_forward(params, x, hidden, cell):
    """Mirrors Decoder.forward.

    x      : (B, T) int32 token ids
    hidden : (1, B, H) float32
    cell   : (1, B, H) float32
    returns (output (B, T, V), hidden (1, B, H), cell (1, B, H))
    """
    B, T = x.shape
    H = hidden.shape[-1]
    V, E = params["emb"].shape

    B_pad = _round_up(max(B, 8), 8)     # f32 sublane granularity
    V_pad = _round_up(V, 128)           # lane-dense output stores

    # --- plain-JAX glue: embedding gather -> time-major slab (T, B_pad, E) ---
    x_pad = jnp.zeros((B_pad, T), x.dtype).at[:B].set(x)
    emb_slab = jnp.transpose(params["emb"][x_pad], (1, 0, 2))

    h0 = jnp.zeros((B_pad, H), jnp.float32).at[:B].set(hidden[0])
    c0 = jnp.zeros((B_pad, H), jnp.float32).at[:B].set(cell[0])

    # Stack weights once: single (E+H, 4H) matmul per step; fold biases.
    w_xh_t = jnp.concatenate([params["w_ih_t"], params["w_hh_t"]], axis=0)
    b = (params["b_ih"] + params["b_hh"]).reshape(1, 4 * H)

    fc_w = jnp.zeros((H, V_pad), jnp.float32).at[:, :V].set(params["fc_w_t"])
    fc_b = jnp.zeros((1, V_pad), jnp.float32).at[:, :V].set(
        params["fc_b"].reshape(1, V))

    out, h_n, c_n = pl.pallas_call(
        _decoder_kernel,
        out_shape=(
            jax.ShapeDtypeStruct((T, B_pad, V_pad), jnp.float32),
            jax.ShapeDtypeStruct((B_pad, H), jnp.float32),
            jax.ShapeDtypeStruct((B_pad, H), jnp.float32),
        ),
        grid_spec=pltpu.PrefetchScalarGridSpec(
            num_scalar_prefetch=0,
            grid=(T,),
            in_specs=[
                # per-step embedding slice (time axis squeezed out)
                pl.BlockSpec((None, B_pad, E), lambda t: (t, 0, 0)),
                # constant blocks: stay resident in VMEM across the grid
                pl.BlockSpec((B_pad, H), lambda t: (0, 0)),
                pl.BlockSpec((B_pad, H), lambda t: (0, 0)),
                pl.BlockSpec((E + H, 4 * H), lambda t: (0, 0)),
                pl.BlockSpec((1, 4 * H), lambda t: (0, 0)),
                pl.BlockSpec((H, V_pad), lambda t: (0, 0)),
                pl.BlockSpec((1, V_pad), lambda t: (0, 0)),
            ],
            out_specs=(
                pl.BlockSpec((None, B_pad, V_pad), lambda t: (t, 0, 0)),
                pl.BlockSpec((B_pad, H), lambda t: (0, 0)),
                pl.BlockSpec((B_pad, H), lambda t: (0, 0)),
            ),
            scratch_shapes=[
                pltpu.VMEM((B_pad, E + H), jnp.float32),   # [x | h] tile
                pltpu.VMEM((B_pad, H), jnp.float32),       # cell state
            ],
        ),
        compiler_params=pltpu.CompilerParams(
            dimension_semantics=("arbitrary",)),   # recurrent time axis
    )(emb_slab, h0, c0, w_xh_t, b, fc_w, fc_b)

    output = jnp.transpose(out[:, :B, :V], (1, 0, 2))      # (B, T, V)
    return output, h_n[None, :B, :], c_n[None, :B, :]


# ----------------------------- Reference (JAX) -------------------------------

def decoder_reference(params, x, hidden, cell):
    """Pure-jnp reference for correctness checking."""
    B, T = x.shape
    H = hidden.shape[-1]
    emb = params["emb"][x]                      # (B, T, E)
    h, c = hidden[0], cell[0]
    outs = []
    for t in range(T):
        g = (emb[:, t] @ params["w_ih_t"] + h @ params["w_hh_t"]
             + params["b_ih"] + params["b_hh"])
        i = jax.nn.sigmoid(g[:, 0:H])
        f = jax.nn.sigmoid(g[:, H:2 * H])
        gg = jnp.tanh(g[:, 2 * H:3 * H])
        o = jax.nn.sigmoid(g[:, 3 * H:4 * H])
        c = f * c + i * gg
        h = o * jnp.tanh(c)
        outs.append(h @ params["fc_w_t"] + params["fc_b"])
    return jnp.stack(outs, axis=1), h[None], c[None]


# ---------------------------------- Params -----------------------------------

def init_params(key, vocab, emb, hidden):
    ks = jax.random.split(key, 7)
    s = 0.1

    def r(k, shape):
        return jax.random.normal(k, shape, dtype=jnp.float32) * s

    return {
        "emb": r(ks[0], (vocab, emb)),
        "w_ih_t": r(ks[1], (emb, 4 * hidden)),      # = weight_ih_l0.T
        "w_hh_t": r(ks[2], (hidden, 4 * hidden)),   # = weight_hh_l0.T
        "b_ih": r(ks[3], (4 * hidden,)),
        "b_hh": r(ks[4], (4 * hidden,)),
        "fc_w_t": r(ks[5], (hidden, vocab)),        # = fc.weight.T
        "fc_b": r(ks[6], (vocab,)),
    }


# ----------------------------------- main -------------------------------------

if __name__ == "__main__":
    B, T = 2, 8
    VOCAB, EMB, HIDDEN = 64, 32, 32

    key = jax.random.PRNGKey(0)
    kp, kx, kh, kc = jax.random.split(key, 4)

    params = init_params(kp, VOCAB, EMB, HIDDEN)
    x = jax.random.randint(kx, (B, T), 0, VOCAB, dtype=jnp.int32)
    hidden = jax.random.normal(kh, (1, B, HIDDEN), dtype=jnp.float32) * 0.1
    cell = jax.random.normal(kc, (1, B, HIDDEN), dtype=jnp.float32) * 0.1

    out, h_n, c_n = decoder_forward(params, x, hidden, cell)
    jax.block_until_ready((out, h_n, c_n))

    assert out.shape == (B, T, VOCAB)
    assert h_n.shape == (1, B, HIDDEN)
    assert c_n.shape == (1, B, HIDDEN)

    ref_out, ref_h, ref_c = decoder_reference(params, x, hidden, cell)
    assert jnp.allclose(out, ref_out, atol=1e-2, rtol=1e-2)
    assert jnp.allclose(h_n, ref_h, atol=1e-2, rtol=1e-2)
    assert jnp.allclose(c_n, ref_c, atol=1e-2, rtol=1e-2)

    print("KERNEL_OK")
</pallas_src>

<mosaic_0001>
module attributes {stable_mosaic.version = 11 : i64} {
  func.func @_decoder_kernel(%arg0: i32, %arg1: memref<1x8x32xf32, #tpu.memory_space<vmem>>, %arg2: memref<8x32xf32, #tpu.memory_space<vmem>>, %arg3: memref<8x32xf32, #tpu.memory_space<vmem>>, %arg4: memref<64x128xf32, #tpu.memory_space<vmem>>, %arg5: memref<1x128xf32, #tpu.memory_space<vmem>>, %arg6: memref<32x128xf32, #tpu.memory_space<vmem>>, %arg7: memref<1x128xf32, #tpu.memory_space<vmem>>, %arg8: memref<1x8x128xf32, #tpu.memory_space<vmem>>, %arg9: memref<8x32xf32, #tpu.memory_space<vmem>>, %arg10: memref<8x32xf32, #tpu.memory_space<vmem>>, %arg11: memref<8x64xf32, #tpu.memory_space<vmem>>, %arg12: memref<8x32xf32, #tpu.memory_space<vmem>>) attributes {dimension_semantics = [#tpu.dimension_semantics<arbitrary>], iteration_bounds = array<i64: 8>, scalar_prefetch = 0 : i64, scratch_operands = 2 : i64, tpu.core_type = #tpu.core_type<tc>, window_params = [{transform_indices = @transform_0, window_bounds = array<i64: 1, 8, 32>}, {pipeline_mode = #tpu.pipeline_mode<synchronous>, transform_indices = @transform_1, window_bounds = array<i64: 8, 32>}, {pipeline_mode = #tpu.pipeline_mode<synchronous>, transform_indices = @transform_2, window_bounds = array<i64: 8, 32>}, {pipeline_mode = #tpu.pipeline_mode<synchronous>, transform_indices = @transform_3, window_bounds = array<i64: 64, 128>}, {pipeline_mode = #tpu.pipeline_mode<synchronous>, transform_indices = @transform_4, window_bounds = array<i64: 1, 128>}, {pipeline_mode = #tpu.pipeline_mode<synchronous>, transform_indices = @transform_5, window_bounds = array<i64: 32, 128>}, {pipeline_mode = #tpu.pipeline_mode<synchronous>, transform_indices = @transform_6, window_bounds = array<i64: 1, 128>}, {transform_indices = @transform_7, window_bounds = array<i64: 1, 8, 128>}, {pipeline_mode = #tpu.pipeline_mode<synchronous>, transform_indices = @transform_8, window_bounds = array<i64: 8, 32>}, {pipeline_mode = #tpu.pipeline_mode<synchronous>, transform_indices = @transform_9, window_bounds = array<i64: 8, 32>}]} {
    %c0_i32 = arith.constant 0 : i32
    %0 = arith.cmpi eq, %arg0, %c0_i32 : i32
    %1 = arith.extui %0 : i1 to i32
    %c0_i32_0 = arith.constant 0 : i32
    %2 = arith.cmpi ne, %1, %c0_i32_0 : i32
    scf.if %2 {
      %c0_31 = arith.constant 0 : index
      %c0_32 = arith.constant 0 : index
      %50 = vector.load %arg2[%c0_31, %c0_32] : memref<8x32xf32, #tpu.memory_space<vmem>>, vector<8x32xf32>
      %c0_33 = arith.constant 0 : index
      %c32_34 = arith.constant 32 : index
      %51 = vector.load %arg11[%c0_33, %c32_34] : memref<8x64xf32, #tpu.memory_space<vmem>>, vector<8x32xf32>
      tpu.vector_store %arg11[%c0_33, %c32_34], %50 {strides = array<i32>} : memref<8x64xf32, #tpu.memory_space<vmem>>, vector<8x32xf32>,
      %c0_35 = arith.constant 0 : index
      %c0_36 = arith.constant 0 : index
      %52 = vector.load %arg3[%c0_35, %c0_36] : memref<8x32xf32, #tpu.memory_space<vmem>>, vector<8x32xf32>
      %c0_37 = arith.constant 0 : index
      %c0_38 = arith.constant 0 : index
      %53 = vector.load %arg12[%c0_37, %c0_38] : memref<8x32xf32, #tpu.memory_space<vmem>>, vector<8x32xf32>
      tpu.vector_store %arg12[%c0_37, %c0_38], %52 {strides = array<i32>} : memref<8x32xf32, #tpu.memory_space<vmem>>, vector<8x32xf32>,
    } else {
    }
    %c0 = arith.constant 0 : index
    %c0_1 = arith.constant 0 : index
    %c0_2 = arith.constant 0 : index
    %3 = vector.load %arg1[%c0, %c0_1, %c0_2] : memref<1x8x32xf32, #tpu.memory_space<vmem>>, vector<1x8x32xf32>
    %4 = vector.shape_cast %3 : vector<1x8x32xf32> to vector<8x32xf32>
    %c0_3 = arith.constant 0 : index
    %c0_4 = arith.constant 0 : index
    %5 = vector.load %arg11[%c0_3, %c0_4] : memref<8x64xf32, #tpu.memory_space<vmem>>, vector<8x32xf32>
    tpu.vector_store %arg11[%c0_3, %c0_4], %4 {strides = array<i32>} : memref<8x64xf32, #tpu.memory_space<vmem>>, vector<8x32xf32>,
    %c0_5 = arith.constant 0 : index
    %c0_6 = arith.constant 0 : index
    %6 = vector.load %arg11[%c0_5, %c0_6] : memref<8x64xf32, #tpu.memory_space<vmem>>, vector<8x64xf32>
    %c0_7 = arith.constant 0 : index
    %c0_8 = arith.constant 0 : index
    %7 = vector.load %arg4[%c0_7, %c0_8] : memref<64x128xf32, #tpu.memory_space<vmem>>, vector<64x128xf32>
    %cst = arith.constant dense<0.000000e+00> : vector<8x128xf32>
    %8 = tpu.matmul %6, %7, %cst {dimension_numbers = #tpu.dot_dimension_numbers<[1], [0], [0], [1], [0, 0, 1, 1], [], []>} : vector<8x64xf32>, vector<64x128xf32>, vector<8x128xf32> -> vector<8x128xf32>
    %c0_9 = arith.constant 0 : index
    %c0_10 = arith.constant 0 : index
    %9 = vector.load %arg5[%c0_9, %c0_10] : memref<1x128xf32, #tpu.memory_space<vmem>>, vector<1x128xf32>
    %10 = vector.broadcast %9 : vector<1x128xf32> to vector<8x128xf32>
    %11 = arith.addf %8, %10 : vector<8x128xf32>
    %12 = vector.extract_strided_slice %11 {offsets = [0, 0], sizes = [8, 32], strides = [1, 1]} : vector<8x128xf32> to vector<8x32xf32>
    %13 = arith.negf %12 : vector<8x32xf32>
    %14 = math.exp %13 : vector<8x32xf32>
    %cst_11 = arith.constant 1.000000e+00 : f32
    %15 = vector.broadcast %cst_11 : f32 to vector<8x32xf32>
    %16 = arith.addf %15, %14 : vector<8x32xf32>
    %17 = arith.divf %15, %16 : vector<8x32xf32>
    %18 = vector.extract_strided_slice %11 {offsets = [0, 32], sizes = [8, 32], strides = [1, 1]} : vector<8x128xf32> to vector<8x32xf32>
    %19 = arith.negf %18 : vector<8x32xf32>
    %20 = math.exp %19 : vector<8x32xf32>
    %cst_12 = arith.constant 1.000000e+00 : f32
    %21 = vector.broadcast %cst_12 : f32 to vector<8x32xf32>
    %22 = arith.addf %21, %20 : vector<8x32xf32>
    %23 = arith.divf %21, %22 : vector<8x32xf32>
    %24 = vector.extract_strided_slice %11 {offsets = [0, 64], sizes = [8, 32], strides = [1, 1]} : vector<8x128xf32> to vector<8x32xf32>
    %25 = math.tanh %24 : vector<8x32xf32>
    %26 = vector.extract_strided_slice %11 {offsets = [0, 96], sizes = [8, 32], strides = [1, 1]} : vector<8x128xf32> to vector<8x32xf32>
    %27 = arith.negf %26 : vector<8x32xf32>
    %28 = math.exp %27 : vector<8x32xf32>
    %cst_13 = arith.constant 1.000000e+00 : f32
    %29 = vector.broadcast %cst_13 : f32 to vector<8x32xf32>
    %30 = arith.addf %29, %28 : vector<8x32xf32>
    %31 = arith.divf %29, %30 : vector<8x32xf32>
    %c0_14 = arith.constant 0 : index
    %c0_15 = arith.constant 0 : index
    %32 = vector.load %arg12[%c0_14, %c0_15] : memref<8x32xf32, #tpu.memory_space<vmem>>, vector<8x32xf32>
    %33 = arith.mulf %23, %32 : vector<8x32xf32>
    %34 = arith.mulf %17, %25 : vector<8x32xf32>
    %35 = arith.addf %33, %34 : vector<8x32xf32>
    %36 = math.tanh %35 : vector<8x32xf32>
    %37 = arith.mulf %31, %36 : vector<8x32xf32>
    %c0_16 = arith.constant 0 : index
    %c0_17 = arith.constant 0 : index
    %38 = vector.load %arg12[%c0_16, %c0_17] : memref<8x32xf32, #tpu.memory_space<vmem>>, vector<8x32xf32>
    tpu.vector_store %arg12[%c0_16, %c0_17], %35 {strides = array<i32>} : memref<8x32xf32, #tpu.memory_space<vmem>>, vector<8x32xf32>,
    %c0_18 = arith.constant 0 : index
    %c32 = arith.constant 32 : index
    %39 = vector.load %arg11[%c0_18, %c32] : memref<8x64xf32, #tpu.memory_space<vmem>>, vector<8x32xf32>
    tpu.vector_store %arg11[%c0_18, %c32], %37 {strides = array<i32>} : memref<8x64xf32, #tpu.memory_space<vmem>>, vector<8x32xf32>,
    %c0_19 = arith.constant 0 : index
    %c0_20 = arith.constant 0 : index
    %40 = vector.load %arg6[%c0_19, %c0_20] : memref<32x128xf32, #tpu.memory_space<vmem>>, vector<32x128xf32>
    %cst_21 = arith.constant dense<0.000000e+00> : vector<8x128xf32>
    %41 = tpu.matmul %37, %40, %cst_21 {dimension_numbers = #tpu.dot_dimension_numbers<[1], [0], [0], [1], [0, 0, 1, 1], [], []>} : vector<8x32xf32>, vector<32x128xf32>, vector<8x128xf32> -> vector<8x128xf32>
    %c0_22 = arith.constant 0 : index
    %c0_23 = arith.constant 0 : index
    %42 = vector.load %arg7[%c0_22, %c0_23] : memref<1x128xf32, #tpu.memory_space<vmem>>, vector<1x128xf32>
    %43 = vector.broadcast %42 : vector<1x128xf32> to vector<8x128xf32>
    %44 = arith.addf %41, %43 : vector<8x128xf32>
    %c0_24 = arith.constant 0 : index
    %c0_25 = arith.constant 0 : index
    %c0_26 = arith.constant 0 : index
    %45 = vector.load %arg8[%c0_24, %c0_25, %c0_26] : memref<1x8x128xf32, #tpu.memory_space<vmem>>, vector<1x8x128xf32>
    %46 = vector.shape_cast %45 : vector<1x8x128xf32> to vector<8x128xf32>
    %47 = vector.shape_cast %44 : vector<8x128xf32> to vector<1x8x128xf32>
    tpu.vector_store %arg8[%c0_24, %c0_25, %c0_26], %47 {strides = array<i32>} : memref<1x8x128xf32, #tpu.memory_space<vmem>>, vector<1x8x128xf32>,
    %c0_27 = arith.constant 0 : index
    %c0_28 = arith.constant 0 : index
    %48 = vector.load %arg9[%c0_27, %c0_28] : memref<8x32xf32, #tpu.memory_space<vmem>>, vector<8x32xf32>
    tpu.vector_store %arg9[%c0_27, %c0_28], %37 {strides = array<i32>} : memref<8x32xf32, #tpu.memory_space<vmem>>, vector<8x32xf32>,
    %c0_29 = arith.constant 0 : index
    %c0_30 = arith.constant 0 : index
    %49 = vector.load %arg10[%c0_29, %c0_30] : memref<8x32xf32, #tpu.memory_space<vmem>>, vector<8x32xf32>
    tpu.vector_store %arg10[%c0_29, %c0_30], %35 {strides = array<i32>} : memref<8x32xf32, #tpu.memory_space<vmem>>, vector<8x32xf32>,
    return
  }
  func.func @transform_0(%arg0: i32) -> (i32, i32, i32) {
    %c0_i32 = arith.constant 0 : i32
    %c0_i32_0 = arith.constant 0 : i32
    %c0_i32_1 = arith.constant 0 : i32
    return %arg0, %c0_i32, %c0_i32_0 : i32, i32, i32
  }
  func.func @transform_1(%arg0: i32) -> (i32, i32) {
    %c0_i32 = arith.constant 0 : i32
    %c0_i32_0 = arith.constant 0 : i32
    %c0_i32_1 = arith.constant 0 : i32
    return %c0_i32, %c0_i32_0 : i32, i32
  }
  func.func @transform_2(%arg0: i32) -> (i32, i32) {
    %c0_i32 = arith.constant 0 : i32
    %c0_i32_0 = arith.constant 0 : i32
    %c0_i32_1 = arith.constant 0 : i32
    return %c0_i32, %c0_i32_0 : i32, i32
  }
  func.func @transform_3(%arg0: i32) -> (i32, i32) {
    %c0_i32 = arith.constant 0 : i32
    %c0_i32_0 = arith.constant 0 : i32
    %c0_i32_1 = arith.constant 0 : i32
    return %c0_i32, %c0_i32_0 : i32, i32
  }
  func.func @transform_4(%arg0: i32) -> (i32, i32) {
    %c0_i32 = arith.constant 0 : i32
    %c0_i32_0 = arith.constant 0 : i32
    %c0_i32_1 = arith.constant 0 : i32
    return %c0_i32, %c0_i32_0 : i32, i32
  }
  func.func @transform_5(%arg0: i32) -> (i32, i32) {
    %c0_i32 = arith.constant 0 : i32
    %c0_i32_0 = arith.constant 0 : i32
    %c0_i32_1 = arith.constant 0 : i32
    return %c0_i32, %c0_i32_0 : i32, i32
  }
  func.func @transform_6(%arg0: i32) -> (i32, i32) {
    %c0_i32 = arith.constant 0 : i32
    %c0_i32_0 = arith.constant 0 : i32
    %c0_i32_1 = arith.constant 0 : i32
    return %c0_i32, %c0_i32_0 : i32, i32
  }
  func.func @transform_7(%arg0: i32) -> (i32, i32, i32) {
    %c0_i32 = arith.constant 0 : i32
    %c0_i32_0 = arith.constant 0 : i32
    %c0_i32_1 = arith.constant 0 : i32
    return %arg0, %c0_i32, %c0_i32_0 : i32, i32, i32
  }
  func.func @transform_8(%arg0: i32) -> (i32, i32) {
    %c0_i32 = arith.constant 0 : i32
    %c0_i32_0 = arith.constant 0 : i32
    %c0_i32_1 = arith.constant 0 : i32
    return %c0_i32, %c0_i32_0 : i32, i32
  }
  func.func @transform_9(%arg0: i32) -> (i32, i32) {
    %c0_i32 = arith.constant 0 : i32
    %c0_i32_0 = arith.constant 0 : i32
    %c0_i32_1 = arith.constant 0 : i32
    return %c0_i32, %c0_i32_0 : i32, i32
  }
}

</mosaic_0001>

<bundles_post_ra>
// kernel: decoder_forward.1
= control target key start
LH: loop header
LB: loop body
LE: loop exit
PB: predicated region body
PF: predicated region fallthrough
CT: control target
= control target key end

     0   :  { %s628_s30 = smov 0   ;;  %s713_s0 = inlined_call_operand.vmem [shape: f32[8,8,32], index: 0, kind: input, shape index: {}]   ;;  %s714_s1 = inlined_call_operand.vmem [shape: f32[8,32], index: 1, kind: input, shape index: {}]   ;;  %s715_s2 = inlined_call_operand.vmem [shape: f32[8,32], index: 2, kind: input, shape index: {}]   ;;  %s716_s3 = inlined_call_operand.vmem [shape: f32[64,128], index: 3, kind: input, shape index: {}]   ;;  %s717_s4 = inlined_call_operand.vmem [shape: f32[1,128], index: 4, kind: input, shape index: {}]   ;;  %s718_s5 = inlined_call_operand.vmem [shape: f32[32,128], index: 5, kind: input, shape index: {}]   ;;  %s719_s6 = inlined_call_operand.vmem [shape: f32[1,128], index: 6, kind: input, shape index: {}]   ;;  %s720_s7 = inlined_call_operand.vmem [shape: f32[8,8,128], index: 7, kind: output, shape index: {0}]   ;;  %s721_s8 = inlined_call_operand.vmem [shape: f32[8,32], index: 8, kind: output, shape index: {1}]   ;;  %s722_s9 = inlined_call_operand.vmem [shape: f32[8,32], index: 9, kind: output, shape index: {2}]  }
   0x1 LB: > { %s531_s10 = sadd.s32 4294967295, %s572_s30   ;;  %p535_p0 = scmp.ge.s32.totalorder %s572_s30, 1  ;;  %s572_s30 = sphi %s628_s30, %s20_s30  }
   0x2   : > { %p281_p1 = scmp.lt.s32.totalorder %s572_s30, 9 }
   0x4   : > { %p282_p2 = pnand %p535_p0, %p281_p1 }
   0x5   : > { %p315_p3 = scmp.lt.s32.totalorder (!%p282_p2), %s531_s10, 7  ;;  %p538_p4 = scmp.ne.s32.totalorder (!%p282_p2), %s531_s10, 0 }
   0x6   : > { %285 = sbr.rel (%p282_p2) target bundleno = 863 (0x35f), region = 48 }
   0xb   : > { %s316_s11 = scalar_select %p315_p3, %s531_s10, 7 }
   0xc   : > { %326 = sbr.rel (%p538_p4) target bundleno = 134 (0x86), region = 52  ;;  %s574_s21 = smov (!%p538_p4), 32  }
   0xd   : > { %s536_s12 = sshll.u32 %s316_s11, 3 }
   0xe   : > { %s318_s15 = scalar_lea.vmem %s713_s0, %s536_s12  ;;  %s642_s18 = scalar_lea.vmem %s720_s7, %s536_s12 }
  0x11   : > { %v327_v0 = vld [vmem:[%s714_s1] sm:$0xff]  ;;  %vm335_vm0 = vcmask 261120   ;;  %vm332_vm1 = vcmask 523520  }
  0x12   : > { %329 = vrot.lane.b32.xlu0 %v327_v0, %s574_s21  ;;  %v334_v1 = vld [vmem:[%s715_s2] sm:$0xff] }
  0x13   : > { %336 = vst.msk [vmem:[#allocation3] sm:$0xff] %vm335_vm0, %v334_v1 }
  0x84   : > { %v330_v2 = vpop.permute.xlu0 %329 }
  0x85   : > { %333 = vst.msk [vmem:[#allocation2] sm:$0xff] %vm332_vm1, %v330_v2 }
  0x86 PF: > { %v348_v3 = vld [vmem:[%s716_s3 + $0x38] sm:$0xff]  ;;  %v347_v4 = vld [vmem:[%s716_s3 + $0x30] sm:$0xff]  ;;  %vm338_vm2 = vcmask 261120   ;;  %v346_v5 = vld [vmem:[%s716_s3 + $0x28] sm:$0xff]  ;;  %vm353_vm3 = vcmask 523264   ;;  %s575_s23 = smov 64  }
  0x87   : > { %365 = vmatpush.msra.mxu0 %v348_v3  ;;  %v337_v6 = vld [vmem:[%s318_s15] sm:$0xff]  ;;  %v344_v8 = vld [vmem:[%s716_s3 + $0x18] sm:$0xff]  ;;  %v343_v9 = vld [vmem:[%s716_s3 + $0x10] sm:$0xff]  ;;  %s576_s24 = smov 32   ;;  %s577_s13 = smov 96   ;;  %vm428_vm8 = vcmask 523520  }
  0x88   : > { %339 = vst.msk [vmem:[#allocation2] sm:$0xff] %vm338_vm2, %v337_v6  ;;  %v345_v7 = vld [vmem:[%s716_s3 + $0x20] sm:$0xff]  ;;  %v342_v10 = vld [vmem:[%s716_s3 + $0x8] sm:$0xff]  ;;  %v433_v38 = vld [vmem:[%s718_s5 + $0x18] sm:$0xff] }
  0x89   : > { %366 = vmatpush.msra.mxu0 %v347_v4  ;;  %v341_v11 = vld [vmem:[%s716_s3] sm:$0xff]  ;;  %v397_v17 = vld [vmem:[#allocation3] sm:$0xff]  ;;  %v432_v39 = vld [vmem:[%s718_s5 + $0x10] sm:$0xff]  ;;  %454 = vmatpush.msra.mxu1 %v433_v38 }
  0x8a   : > { %v556_v13 = vld [vmem:[%s717_s4] ss:$0 sm:$0xff]  ;;  %v431_v40 = vld [vmem:[%s718_s5 + $0x8] sm:$0xff] }
  0x8b   : > { %367 = vmatpush.msra.mxu0 %v346_v5  ;;  %455 = vmatpush.msra.mxu1 %v432_v39  ;;  %v430_v41 = vld [vmem:[%s718_s5] sm:$0xff] }
  0x8c   : > { %v557_v47 = vld [vmem:[%s719_s6] ss:$0 sm:$0xff] }
  0x8d   : > { %368 = vmatpush.msra.mxu0 %v345_v7  ;;  %456 = vmatpush.msra.mxu1 %v431_v40 }
  0x8f   : > { %369 = vmatpush.msra.mxu0 %v344_v8  ;;  %v340_v12 = vld [vmem:[#allocation2] sm:$0xff]  ;;  %457 = vmatpush.msra.mxu1 %v430_v41 }
  0x91   : > { %370 = vmatpush.msra.mxu0 %v343_v9 }
  0x93   : > { %371 = vmatpush.msra.mxu0 %v342_v10 }
  0x95   : > { %372 = vmatpush.msra.mxu0 %v341_v11 }
  0x96   : > { %539 = vmatmul.msk.f32.vlgmr.msra.gmra.mxu0 %vm353_vm3, %v340_v12 }
 0x113   : > { %v374_v14 = vpop.f32.mrf.mxu0 }
 0x114   : > { %v375_v15 = vadd.f32 %v556_v13, %v374_v14 }
 0x116   : > { %558 = vtanh.f32 %v375_v15  ;;  %v540_v18 = vmul.f32 -1.442695, %v375_v15 }
 0x118   : > { %560 = vpow2.f32 %v540_v18 }
 0x11c   : > { %v559_v16 = vpop.eup %558 }
 0x11d   : > { %404 = vrot.lane.b32.xlu0 %v559_v16, %s575_s23 }
 0x11e   : > { %v561_v19 = vpop.eup %560 }
 0x11f   : > { %v380_v20 = vadd.f32 1.0, %v561_v19 }
 0x121   : > { %562 = vrcp.f32 %v380_v20  ;;  %v392_v26 = vand.u32 2147483648, %v380_v20  ;;  %vm386_vm5 = vweird.f32 %v380_v20  ;;  %v390_v27 = vand.u32 2147483647, %v380_v20 }
 0x123   : > { %v393_v29 = vor.u32 1.1754944e-38, %v392_v26  ;;  %vm391_vm7 = vcmp.eq.f32.partialorder %v390_v27, 8.507059e+37 }
 0x125   : > { %399 = vrot.lane.b32.xlu0 %v397_v17, %s576_s24 }
 0x127   : > { %v563_v21 = vpop.eup %562 }
 0x128   : > { %v382_v22 = vmul.f32 %v563_v21, %v380_v20  ;;  %vm387_vm4 = vweird.f32 %v563_v21 }
 0x129   : > { %vm388_vm6 = vmor %vm386_vm5, %vm387_vm4 }
 0x12a   : > { %v383_v23 = vsub.f32 1.0, %v382_v22 }
 0x12c   : > { %v384_v24 = vmul.f32 %v563_v21, %v383_v23 }
 0x12e   : > { %v385_v25 = vadd.f32 %v563_v21, %v384_v24 }
 0x130   : > { %v389_v28 = vsel %vm388_vm6, %v563_v21, %v385_v25 }
 0x131   : > { %v394_v31 = vsel %vm391_vm7, %v393_v29, %v389_v28 }
 0x18f   : > { %v405_v30 = vpop.permute.xlu0 %404 }
 0x190   : > { %v407_v32 = vmul.f32 %v405_v30, %v394_v31 }
 0x192   : > { %409 = vrot.lane.b32.xlu1 %v407_v32, %s576_s24 }
 0x197   : > { %v400_v33 = vpop.permute.xlu0 %399 }
 0x198   : > { %v402_v34 = vmul.f32 %v400_v33, %v394_v31 }
 0x204   : > { %v410_v35 = vpop.permute.xlu1 %409 }
 0x205   : > { %v412_v36 = vadd.f32 %v410_v35, %v402_v34 }
 0x207   : > { %564 = vtanh.f32 %v412_v36 }
 0x20d   : > { %v565_v37 = vpop.eup %564 }
 0x20e   : > { %415 = vrot.lane.b32.xlu1 %v565_v37, %s575_s23 }
 0x280   : > { %v416_v42 = vpop.permute.xlu1 %415 }
 0x281   : > { %v418_v43 = vmul.f32 %v416_v42, %v394_v31 }
 0x283   : > { %425 = vrot.lane.b32.xlu0 %v418_v43, %s575_s23  ;;  %438 = vrot.lane.b32.xlu2 %v418_v43, %s576_s24 }
 0x28b   : > { %420 = vrot.lane.b32.xlu2 %v412_v36, %s577_s13 }
 0x2dd   : > { %v439_v44 = vpop.permute.xlu2 %438 }
 0x2de   : > { %464 = vst.msk [vmem:[%s721_s8] sm:$0xff] %vm338_vm2, %v439_v44  ;;  %541 = vmatmul.msk.f32.vlgmr.msra.gmra.mxu1 %vm338_vm2, %v439_v44 }
 0x2e5   : > { %v421_v45 = vpop.permute.xlu2 %420 }
 0x2e6   : > { %423 = vst.msk [vmem:[#allocation3] sm:$0xff] %vm338_vm2, %v421_v45 }
 0x2e7   : > { %465 = vst.msk [vmem:[%s722_s9] sm:$0xff] %vm338_vm2, %v421_v45 }
 0x2f5   : > { %v426_v46 = vpop.permute.xlu0 %425 }
 0x2f6   : > { %429 = vst.msk [vmem:[#allocation2] sm:$0xff] %vm428_vm8, %v426_v46 }
 0x35b   : > { %v459_v48 = vpop.f32.mrf.mxu1 }
 0x35c   : > { %v460_v49 = vadd.f32 %v557_v47, %v459_v48 }
 0x35e   : > { %462 = vst [vmem:[%s642_s18] sm:$0xff] %v460_v49 }
 0x35f PF: > { %s20_s30 = sadd.s32 1, %s572_s30  }
 0x360   : > { %p17_p5 = scmp.ge.s32.totalorder %s20_s30, 10  }
 0x362   :  { %19 = sbr.rel (!%p17_p5) target bundleno = 1 (0x1), region = 98 }

</bundles_post_ra>
